<compile_context>
chip_gen: v5e
topology: v5e:2x2
jax: 0.10.0
libtpu: 0.0.40
codegen_flags: <defaults>
</compile_context>

<pallas_src>
import functools

import jax
import jax.numpy as jnp
from jax import lax
from jax.experimental import pallas as pl
from jax.experimental.pallas import tpu as pltpu


def _conv1d_block_kernel(x_ref, w_ref, gamma_ref, beta_ref, o_ref, *,
                         dilation: int, eps: float, K: int, L_out: int):
    """x_ref: (N, C_in, L) bf16, w_ref: (C_out, K*C_in) bf16 (k-major columns),
    gamma_ref/beta_ref: (C_out, 1) f32, o_ref: (C_out, L_pad) f32."""
    N = x_ref.shape[0]
    KC = w_ref.shape[1]
    L_pad = o_ref.shape[-1]
    n_valid = N * L_out

    w = w_ref[...]                                     # (C_out, K*C_in) bf16

    # ---- im2col slab: slab[k*C_in + c, n*L_out + t] = x[n, c, t + k*dilation] ----
    # Static per-batch / per-tap slices + concatenation only (no in-kernel
    # reshape of the lane dim), batch folded into the lane axis.
    cols = []
    for n in range(N):                                 # small static batch, unrolled
        xn = x_ref[n]                                  # (C_in, L) bf16
        taps = [xn[:, k * dilation:k * dilation + L_out] for k in range(K)]
        cols.append(jnp.concatenate(taps, axis=0))     # (K*C_in, L_out)
    if L_pad > n_valid:                                # lane-dense zero padding
        cols.append(jnp.zeros((KC, L_pad - n_valid), w.dtype))
    slab = jnp.concatenate(cols, axis=1)               # (K*C_in, L_pad) bf16

    # ---- Conv1d as a single MXU matmul, f32 accumulation ----
    # (Conv bias omitted: exactly cancelled by the batch-mean subtraction below.)
    y = jnp.dot(w, slab, preferred_element_type=jnp.float32)   # (C_out, L_pad) f32

    # ---- BatchNorm1d, training-mode forward (biased batch stats), one pass ----
    # Zero-padded lanes contribute 0 to both sums; divide by the true count.
    inv_n = 1.0 / float(n_valid)
    s1 = jnp.sum(y, axis=1, keepdims=True)             # (C_out, 1)
    s2 = jnp.sum(y * y, axis=1, keepdims=True)         # (C_out, 1)
    mean = s1 * inv_n
    var = jnp.maximum(s2 * inv_n - mean * mean, 0.0)   # biased variance, clamped
    scale = gamma_ref[...] * lax.rsqrt(var + eps)      # (C_out, 1)
    shift = beta_ref[...] - mean * scale               # (C_out, 1)

    # ---- fused normalize + affine + ReLU;  Dropout(p=0) is the identity ----
    # TODO(synk): nonzero dropout would need pltpu.prng_seed / prng_random_bits.
    o_ref[...] = jnp.maximum(y * scale + shift, 0.0)   # full-lane, unmasked store


def conv1d_block(x, w, b, gamma, beta, *, dilation: int = 1, eps: float = 1e-5):
    """x: (N, C_in, L) f32, w: (C_out, C_in, K), b/gamma/beta: (C_out,).
    Returns (N, C_out, L_out) f32 with L_out = L - dilation*(K-1)."""
    N, C_in, L = x.shape
    C_out, _, K = w.shape
    L_out = L - dilation * (K - 1)
    assert L_out > 0

    # Conv bias is exactly cancelled by training-mode BN mean subtraction.
    del b

    n_valid = N * L_out
    L_pad = ((n_valid + 127) // 128) * 128             # lane-dense output slab width

    # k-major flattening so weight column (k*C_in + c) matches the slab row order.
    w2 = jnp.transpose(w, (0, 2, 1)).reshape(C_out, K * C_in).astype(jnp.bfloat16)
    x_bf = x.astype(jnp.bfloat16)                      # bf16 MXU operands, f32 accum
    gamma2 = gamma.reshape(C_out, 1).astype(jnp.float32)
    beta2 = beta.reshape(C_out, 1).astype(jnp.float32)

    kernel = functools.partial(_conv1d_block_kernel,
                               dilation=dilation, eps=eps, K=K, L_out=L_out)
    vmem = pl.BlockSpec(memory_space=pltpu.MemorySpace.VMEM)

    y2d = pl.pallas_call(
        kernel,
        out_shape=jax.ShapeDtypeStruct((C_out, L_pad), jnp.float32),
        in_specs=[vmem, vmem, vmem, vmem],
        out_specs=vmem,
    )(x_bf, w2, gamma2, beta2)

    # Wrapper-side layout plumbing: drop pad lanes, unfold batch, back to NCL.
    y2d = y2d[:, :n_valid].reshape(C_out, N, L_out)
    return jnp.transpose(y2d, (1, 0, 2))               # (N, C_out, L_out)


def _reference(x, w, b, gamma, beta, *, dilation=1, eps=1e-5):
    """Pure-JAX f32 reference matching the PyTorch module's forward."""
    y = lax.conv_general_dilated(
        x, w, window_strides=(1,), padding="VALID",
        rhs_dilation=(dilation,), dimension_numbers=("NCH", "OIH", "NCH"))
    y = y + b[None, :, None]
    mean = jnp.mean(y, axis=(0, 2), keepdims=True)
    var = jnp.mean((y - mean) ** 2, axis=(0, 2), keepdims=True)   # biased
    y = (y - mean) * lax.rsqrt(var + eps)
    y = y * gamma[None, :, None] + beta[None, :, None]
    return jnp.maximum(y, 0.0)


if __name__ == "__main__":
    # Small shapes consistent with the module: Conv1d(in=4, out=8, k=3), L=16.
    N, C_in, C_out, K, L = 2, 4, 8, 3, 16
    dilation = 1

    key = jax.random.PRNGKey(0)
    kx, kw, kb = jax.random.split(key, 3)
    x = jax.random.normal(kx, (N, C_in, L), dtype=jnp.float32)
    # Deterministic init mimicking PyTorch's uniform(-1/sqrt(fan_in), +1/sqrt(fan_in)).
    bound = 1.0 / (C_in * K) ** 0.5
    w = jax.random.uniform(kw, (C_out, C_in, K), jnp.float32, -bound, bound)
    b = jax.random.uniform(kb, (C_out,), jnp.float32, -bound, bound)
    gamma = jnp.ones((C_out,), jnp.float32)    # BatchNorm1d default weight
    beta = jnp.zeros((C_out,), jnp.float32)    # BatchNorm1d default bias

    out = conv1d_block(x, w, b, gamma, beta, dilation=dilation)
    out = jax.block_until_ready(out)

    ref = _reference(x, w, b, gamma, beta, dilation=dilation)
    assert out.shape == (N, C_out, L - dilation * (K - 1))
    # Tolerance accounts for bf16 MXU operands (f32 accumulation); BN output is O(1).
    assert jnp.allclose(out, ref, atol=2e-2, rtol=2e-2), "mismatch vs reference"

    print("KERNEL_OK")
</pallas_src>

<mosaic_0001>
module attributes {stable_mosaic.version = 11 : i64} {
  func.func @_conv1d_block_kernel(%arg0: memref<2x4x16xbf16, #tpu.memory_space<vmem>>, %arg1: memref<8x12xbf16, #tpu.memory_space<vmem>>, %arg2: memref<8x1xf32, #tpu.memory_space<vmem>>, %arg3: memref<8x1xf32, #tpu.memory_space<vmem>>, %arg4: memref<8x128xf32, #tpu.memory_space<vmem>>) attributes {dimension_semantics = [], scalar_prefetch = 0 : i64, scratch_operands = 0 : i64, tpu.core_type = #tpu.core_type<tc>} {
    %c0 = arith.constant 0 : index
    %c0_0 = arith.constant 0 : index
    %0 = vector.load %arg1[%c0, %c0_0] : memref<8x12xbf16, #tpu.memory_space<vmem>>, vector<8x12xbf16>
    %c0_1 = arith.constant 0 : index
    %c0_2 = arith.constant 0 : index
    %c0_3 = arith.constant 0 : index
    %1 = vector.load %arg0[%c0_1, %c0_2, %c0_3] : memref<2x4x16xbf16, #tpu.memory_space<vmem>>, vector<1x4x16xbf16>
    %2 = vector.shape_cast %1 : vector<1x4x16xbf16> to vector<4x16xbf16>
    %3 = vector.extract_strided_slice %2 {offsets = [0, 0], sizes = [4, 14], strides = [1, 1]} : vector<4x16xbf16> to vector<4x14xbf16>
    %4 = vector.extract_strided_slice %2 {offsets = [0, 1], sizes = [4, 14], strides = [1, 1]} : vector<4x16xbf16> to vector<4x14xbf16>
    %5 = vector.extract_strided_slice %2 {offsets = [0, 2], sizes = [4, 14], strides = [1, 1]} : vector<4x16xbf16> to vector<4x14xbf16>
    %6 = tpu.concatenate %3, %4, %5 in 0 : vector<4x14xbf16>, vector<4x14xbf16>, vector<4x14xbf16> -> vector<12x14xbf16>
    %c1 = arith.constant 1 : index
    %c0_4 = arith.constant 0 : index
    %c0_5 = arith.constant 0 : index
    %7 = vector.load %arg0[%c1, %c0_4, %c0_5] : memref<2x4x16xbf16, #tpu.memory_space<vmem>>, vector<1x4x16xbf16>
    %8 = vector.shape_cast %7 : vector<1x4x16xbf16> to vector<4x16xbf16>
    %9 = vector.extract_strided_slice %8 {offsets = [0, 0], sizes = [4, 14], strides = [1, 1]} : vector<4x16xbf16> to vector<4x14xbf16>
    %10 = vector.extract_strided_slice %8 {offsets = [0, 1], sizes = [4, 14], strides = [1, 1]} : vector<4x16xbf16> to vector<4x14xbf16>
    %11 = vector.extract_strided_slice %8 {offsets = [0, 2], sizes = [4, 14], strides = [1, 1]} : vector<4x16xbf16> to vector<4x14xbf16>
    %12 = tpu.concatenate %9, %10, %11 in 0 : vector<4x14xbf16>, vector<4x14xbf16>, vector<4x14xbf16> -> vector<12x14xbf16>
    %cst = arith.constant 0.000000e+00 : bf16
    %13 = vector.broadcast %cst : bf16 to vector<12x100xbf16>
    %14 = tpu.concatenate %6, %12, %13 in 1 : vector<12x14xbf16>, vector<12x14xbf16>, vector<12x100xbf16> -> vector<12x128xbf16>
    %cst_6 = arith.constant dense<0.000000e+00> : vector<8x128xf32>
    %15 = tpu.matmul %0, %14, %cst_6 {dimension_numbers = #tpu.dot_dimension_numbers<[1], [0], [0], [1], [0, 0, 1, 1], [], []>} : vector<8x12xbf16>, vector<12x128xbf16>, vector<8x128xf32> -> vector<8x128xf32>
    %cst_7 = arith.constant dense<0.000000e+00> : vector<8xf32>
    %16 = vector.multi_reduction <add>, %15, %cst_7 [1] : vector<8x128xf32> to vector<8xf32>
    %17 = vector.shape_cast %16 : vector<8xf32> to vector<8x1xf32>
    %18 = arith.mulf %15, %15 : vector<8x128xf32>
    %cst_8 = arith.constant dense<0.000000e+00> : vector<8xf32>
    %19 = vector.multi_reduction <add>, %18, %cst_8 [1] : vector<8x128xf32> to vector<8xf32>
    %20 = vector.shape_cast %19 : vector<8xf32> to vector<8x1xf32>
    %cst_9 = arith.constant 0.0357142873 : f32
    %21 = vector.broadcast %cst_9 : f32 to vector<8x1xf32>
    %22 = arith.mulf %17, %21 : vector<8x1xf32>
    %cst_10 = arith.constant 0.0357142873 : f32
    %23 = vector.broadcast %cst_10 : f32 to vector<8x1xf32>
    %24 = arith.mulf %20, %23 : vector<8x1xf32>
    %25 = arith.mulf %22, %22 : vector<8x1xf32>
    %26 = arith.subf %24, %25 : vector<8x1xf32>
    %cst_11 = arith.constant 0.000000e+00 : f32
    %27 = vector.broadcast %cst_11 : f32 to vector<8x1xf32>
    %28 = arith.maximumf %26, %27 : vector<8x1xf32>
    %c0_12 = arith.constant 0 : index
    %c0_13 = arith.constant 0 : index
    %29 = vector.load %arg2[%c0_12, %c0_13] : memref<8x1xf32, #tpu.memory_space<vmem>>, vector<8x1xf32>
    %cst_14 = arith.constant 9.99999974E-6 : f32
    %30 = vector.broadcast %cst_14 : f32 to vector<8x1xf32>
    %31 = arith.addf %28, %30 : vector<8x1xf32>
    %32 = math.rsqrt %31 : vector<8x1xf32>
    %33 = arith.mulf %29, %32 : vector<8x1xf32>
    %c0_15 = arith.constant 0 : index
    %c0_16 = arith.constant 0 : index
    %34 = vector.load %arg3[%c0_15, %c0_16] : memref<8x1xf32, #tpu.memory_space<vmem>>, vector<8x1xf32>
    %35 = arith.mulf %22, %33 : vector<8x1xf32>
    %36 = arith.subf %34, %35 : vector<8x1xf32>
    %37 = vector.broadcast %33 : vector<8x1xf32> to vector<8x128xf32>
    %38 = arith.mulf %15, %37 : vector<8x128xf32>
    %39 = vector.broadcast %36 : vector<8x1xf32> to vector<8x128xf32>
    %40 = arith.addf %38, %39 : vector<8x128xf32>
    %cst_17 = arith.constant 0.000000e+00 : f32
    %41 = vector.broadcast %cst_17 : f32 to vector<8x128xf32>
    %42 = arith.maximumf %40, %41 : vector<8x128xf32>
    %c0_18 = arith.constant 0 : index
    %c0_19 = arith.constant 0 : index
    %43 = vector.load %arg4[%c0_18, %c0_19] : memref<8x128xf32, #tpu.memory_space<vmem>>, vector<8x128xf32>
    tpu.vector_store %arg4[%c0_18, %c0_19], %42 {strides = array<i32>} : memref<8x128xf32, #tpu.memory_space<vmem>>, vector<8x128xf32>,
    return
  }
}

</mosaic_0001>

<bundles_post_ra>
// kernel: tpu_custom_call.1
= control target key start
LH: loop header
LB: loop body
LE: loop exit
PB: predicated region body
PF: predicated region fallthrough
CT: control target
= control target key end

     0   :  { %s229_s0 = inlined_call_operand.vmem [shape: bf16[2,4,16], index: 0, kind: input, shape index: {}]   ;;  %s230_s1 = inlined_call_operand.vmem [shape: bf16[8,12], index: 1, kind: input, shape index: {}]   ;;  %s231_s2 = inlined_call_operand.vmem [shape: f32[8,1], index: 2, kind: input, shape index: {}]   ;;  %s232_s3 = inlined_call_operand.vmem [shape: f32[8,1], index: 3, kind: input, shape index: {}]   ;;  %s233_s4 = inlined_call_operand.hbm [shape: f32[8,128], index: 4, kind: output, shape index: {}]  }
   0x1   :  { %v20_v0 = vld [vmem:[%s229_s0] sm:$0x3] }
   0x2   :  { %23 = vst [vmem:[#allocation1 + $0x1] ss:$4 sm:$0xff] %v20_v0 }
   0x3   :  { %9 = vsyncpa [#allocation3], 0  ;;  %s181_s17 = smov 127   ;;  %v144_v2 = vld [vmem:[%s229_s0 + $0x2] sm:$0x3]  ;;  %s182_s20 = smov 126  }
   0x4   :  { %vm34_vm0 = vcmask 1041408   ;;  %vm37_vm1 = vcmask 1043456   ;;  %s183_s0 = smov 14   ;;  %vm62_vm2 = vcmask 113664   ;;  %vm65_vm3 = vcmask 228352   ;;  %v98_v36 = vld [vmem:[%s231_s2] sm:$0xff] }
   0x5   :  { %vm72_vm4 = vcmask 1045504   ;;  %v19_v18 = vld [vmem:[%s230_s1] sm:$0xf]  ;;  %vm68_vm5 = vcmask 97280   ;;  %v184_v22 = vmov 0   ;;  %s185_s26 = smov [#allocation2]  }
   0x6   :  { %151 = vset.pattern.permute.xlu1 %v184_v22  ;;  %152 = vset.pattern.permute.xlu0 %v184_v22  ;;  %v111_v41 = vld [vmem:[%s232_s3] sm:$0xff]  ;;  %s133_s27 = sshll.u32 %s185_s26, 4  ;;  %s135_s2 = sshll.u32 %s233_s4, 4  ;;  %s134_s27 = int_to_ptr.vmem [resolvable:$true] %s133_s27  ;;  %s136_s2 = int_to_ptr.hbm [resolvable:$true] %s135_s2 }
   0x9   :  { %v24_v1 = vld.sshfl [vmem:[#allocation1] sm:$0xff pattern:$0x73625140] }
   0xa   :  { %29 = vst [vmem:[#allocation1 + $0x2] ss:$4 sm:$0xff] %v20_v0  ;;  %26 = vrot.lane.b32.xlu1 %v24_v1, %s181_s17 }
  0x11   :  { %v30_v3 = vld.sshfl [vmem:[#allocation1] sm:$0xff pattern:$0x73625140] }
  0x12   :  { %44 = vst [vmem:[#allocation1 + $0x1] ss:$4 sm:$0xff] %v144_v2  ;;  %32 = vrot.lane.b32.xlu1 %v30_v3, %s182_s20 }
  0x19   :  { %v45_v4 = vld.sshfl [vmem:[#allocation1] sm:$0xff pattern:$0x73625140] }
  0x1a   :  { %47 = vrot.lane.b32.xlu0 %v45_v4, %s181_s17  ;;  %50 = vst [vmem:[#allocation1 + $0x2] ss:$4 sm:$0xff] %v144_v2 }
  0x21   :  { %v51_v5 = vld.sshfl [vmem:[#allocation1] sm:$0xff pattern:$0x73625140] }
  0x22   :  { %53 = vrot.lane.b32.xlu0 %v51_v5, %s182_s20 }
  0x7c   :  { %v27_v6 = vpop.permute.xlu1 %26 }
  0x7d   :  { %v36_v7 = vsel %vm34_vm0, %v20_v0, %v27_v6 }
  0x84   :  { %v33_v8 = vpop.permute.xlu1 %32 }
  0x85   :  { %v39_v9 = vsel %vm37_vm1, %v36_v7, %v33_v8 }
  0x8c   :  { %v48_v10 = vpop.permute.xlu0 %47 }
  0x8d   :  { %v56_v11 = vsel %vm34_vm0, %v144_v2, %v48_v10 }
  0x94   :  { %v54_v12 = vpop.permute.xlu0 %53 }
  0x95   :  { %v58_v13 = vsel %vm37_vm1, %v56_v11, %v54_v12 }
  0x96   :  { %60 = vrot.lane.b32.xlu2 %v58_v13, %s183_s0 }
  0xf0   :  { %v61_v14 = vpop.permute.xlu2 %60 }
  0xf1   :  { %v64_v15 = vsel %vm62_vm2, %v39_v9, %v61_v14 }
  0xf2   :  { %v67_v16 = vsel %vm65_vm3, %v64_v15, 0 }
  0xf3   :  { %v73_v17 = vsel %vm72_vm4, %v67_v16, 0 }
  0xf4   :  { %82 = vmatpush.bf16.msra.mxu0 %v73_v17 }
  0xf7   :  { %145 = vmatmul.msk.bf16.vlgmr.msra.gmra.mxu0 %vm68_vm5, %v19_v18 }
 0x174   :  { %v84_v19 = vpop.f32.mrf.mxu0 }
 0x175   :  { %88 = vadd.xlane.f32.xlu2 %v84_v19  ;;  %v90_v20 = vmul.f32 %v84_v19, %v84_v19 }
 0x177   :  { %91 = vadd.xlane.f32.xlu0 %v90_v20 }
 0x17c   :  { %v86_v21 = vpop.f32.mrf.mxu0 }
 0x1e8   :  { %v89_v23 = vpop.xlane.xlu2 %88 }
 0x1e9   :  { %v93_v24 = vmul.f32 0.035714287, %v89_v23 }
 0x1ea   :  { %v92_v25 = vpop.xlane.xlu0 %91 }
 0x1eb   :  { %v95_v26 = vmul.f32 %v93_v24, %v93_v24  ;;  %v94_v27 = vmul.f32 0.035714287, %v92_v25 }
 0x1ed   :  { %v96_v28 = vsub.f32 %v94_v27, %v95_v26 }
 0x1ef   :  { %v97_v29 = vmax.f32 %v96_v28, 0.0 }
 0x1f1   :  { %v99_v30 = vadd.f32 1e-05, %v97_v29 }
 0x1f3   :  { %153 = vrsqrt.f32 %v99_v30  ;;  %vm106_vm7 = vweird.f32 %v99_v30 }
 0x1f9   :  { %v154_v31 = vpop.eup %153 }
 0x1fa   :  { %v101_v32 = vmul.f32 %v154_v31, %v99_v30  ;;  %vm107_vm6 = vweird.f32 %v154_v31 }
 0x1fb   :  { %vm108_vm8 = vmor %vm106_vm7, %vm107_vm6 }
 0x1fc   :  { %v102_v33 = vmul.f32 %v154_v31, %v101_v32 }
 0x1fe   :  { %v103_v34 = vmul.f32 0.5, %v102_v33 }
 0x200   :  { %v104_v35 = vsub.f32 1.5, %v103_v34 }
 0x202   :  { %v105_v37 = vmul.f32 %v154_v31, %v104_v35 }
 0x204   :  { %v109_v38 = vsel %vm108_vm8, %v154_v31, %v105_v37 }
 0x205   :  { %v110_v39 = vmul.f32 %v109_v38, %v98_v36 }
 0x207   :  { %116 = vperm.xlu1 %151, %v110_v39   ;;  %v112_v40 = vmul.f32 %v110_v39, %v93_v24 }
 0x209   :  { %v113_v42 = vsub.f32 %v111_v41, %v112_v40 }
 0x20f   :  { %122 = vperm.xlu1 %151, %v113_v42  }
 0x279   :  { %v117_v43 = vpop.permute.xlu1 %116 }
 0x27a   :  { %v119_v44 = vmul.f32 %v117_v43, %v84_v19 }
 0x281   :  { %v123_v45 = vpop.permute.xlu1 %122 }
 0x282   :  { %v125_v46 = vadd.f32 %v123_v45, %v119_v44 }
 0x284   :  { %v126_v47 = vmax.f32 %v125_v46, 0.0 }
 0x286   :  { %127 = vst [vmem:[#allocation2] sm:$0xff] %v126_v47 }
 0x287   :  { %138 = dma.vmem_to_hbm [thread:$0]  %s134_s27, 128, %s136_s2, [#allocation3]  }
 0x288   :  { %179 = dma.done.wait [#allocation3], 128  }
 0x289   :  { %180 = vsyncadd [#allocation3], 4294967168 }
 0x28a   :  { %143 = vsyncpa [#allocation3], 1 }

</bundles_post_ra>
